<compile_context>
chip_gen: v7x
topology: tpu7x:2x2x1
jax: 0.10.0
libtpu: 0.0.40
codegen_flags: <defaults>
</compile_context>

<pallas_src>
import jax
import jax.numpy as jnp
from jax.experimental import pallas as pl
from jax.experimental.pallas import tpu as pltpu

# ------------------------- model hyper-parameters -------------------------
B = 2          # batch
S = 8          # sequence length (the broadcast dim the PyTorch unsqueeze(1) targets)
NUM_IN = 32    # Linear in-features
NUM_OUT = 32   # Linear out-features / embedding dim
N_STEPS = 16   # diffusion timesteps (embedding rows)


def _make_kernel(Bn, Sn):
    def conditional_linear_kernel(t_ref, x_ref, w_ref, b_ref, emb_ref, out_ref):
        """Single-step kernel: whole batch resident in VMEM.

        t_ref   : (Bn,)              int32, SMEM (scalar prefetch)
        x_ref   : (Bn*Sn, NUM_IN)    f32
        w_ref   : (NUM_IN, NUM_OUT)  f32
        b_ref   : (1, NUM_OUT)       f32
        emb_ref : (N_STEPS, NUM_OUT) f32
        out_ref : (Bn*Sn, NUM_OUT)   f32
        """
        # Fused Linear over all Bn*Sn rows in a single MXU push.
        z = jnp.dot(x_ref[...], w_ref[...],
                    preferred_element_type=jnp.float32) + b_ref[...]
        # Softplus (PyTorch default beta=1), numerically stable form.
        # exp/log run on the EUP slot, VPU only does max/abs/add.
        sp = jnp.maximum(z, 0.0) + jnp.log(1.0 + jnp.exp(-jnp.abs(z)))

        # Per-batch embedding scale: gather gamma row with a dynamic sublane
        # slice (index comes from SMEM) and broadcast over that batch's Sn rows.
        for b in range(Bn):                                   # static tiny loop
            gamma = emb_ref[pl.ds(t_ref[b], 1), :]            # (1, NUM_OUT)
            out_ref[b * Sn:(b + 1) * Sn, :] = sp[b * Sn:(b + 1) * Sn, :] * gamma

    return conditional_linear_kernel


def conditional_linear(x, t, w, bias, emb):
    """x: (B, S, NUM_IN) f32, t: (B,) int32. Returns (B, S, NUM_OUT) f32."""
    Bn, Sn, n_in = x.shape
    n_out = w.shape[1]
    x_flat = x.reshape(Bn * Sn, n_in)          # flatten batch*seq for one matmul

    grid_spec = pltpu.PrefetchScalarGridSpec(
        num_scalar_prefetch=1,                  # t -> SMEM, visible to index_maps too
        grid=(1,),                              # whole problem in one invocation
        in_specs=[
            pl.BlockSpec((Bn * Sn, n_in), lambda i, t: (0, 0)),   # x (flattened)
            pl.BlockSpec((n_in, n_out), lambda i, t: (0, 0)),     # W
            pl.BlockSpec((1, n_out), lambda i, t: (0, 0)),        # bias
            pl.BlockSpec(emb.shape, lambda i, t: (0, 0)),         # embedding table
        ],
        out_specs=pl.BlockSpec((Bn * Sn, n_out), lambda i, t: (0, 0)),
    )

    out_flat = pl.pallas_call(
        _make_kernel(Bn, Sn),
        out_shape=jax.ShapeDtypeStruct((Bn * Sn, n_out), jnp.float32),
        grid_spec=grid_spec,
        compiler_params=pltpu.CompilerParams(
            dimension_semantics=("arbitrary",)),
    )(t, x_flat, w, bias, emb)

    return out_flat.reshape(Bn, Sn, n_out)


# ------------------------- pure-JAX reference -------------------------
def reference(x, t, w, bias, emb):
    z = jnp.einsum("bsi,io->bso", x, w) + bias
    sp = jax.nn.softplus(z)
    gamma = emb[t]                       # (B, NUM_OUT)
    return gamma[:, None, :] * sp        # == gamma.unsqueeze(1) * out


if __name__ == "__main__":
    key = jax.random.PRNGKey(0)
    kx, kt, kw, ke = jax.random.split(key, 4)

    x = jax.random.normal(kx, (B, S, NUM_IN), jnp.float32)
    t = jax.random.randint(kt, (B,), 0, N_STEPS, dtype=jnp.int32)
    w = 0.1 * jax.random.normal(kw, (NUM_IN, NUM_OUT), jnp.float32)   # Linear weight
    bias = 0.01 * jnp.ones((1, NUM_OUT), jnp.float32)                 # Linear bias
    emb = jax.random.uniform(ke, (N_STEPS, NUM_OUT), jnp.float32)     # .uniform_() init

    out = conditional_linear(x, t, w, bias, emb)
    out = jax.block_until_ready(out)

    ref = reference(x, t, w, bias, emb)
    assert out.shape == (B, S, NUM_OUT)
    assert jnp.allclose(out, ref, atol=1e-4, rtol=1e-4), \
        f"max abs err {jnp.max(jnp.abs(out - ref))}"

    print("KERNEL_OK")
</pallas_src>

<mosaic_0001>
module attributes {stable_mosaic.version = 11 : i64} {
  func.func @conditional_linear_kernel(%arg0: i32, %arg1: memref<2xi32, #tpu.memory_space<smem>>, %arg2: memref<16x32xf32, #tpu.memory_space<vmem>>, %arg3: memref<32x32xf32, #tpu.memory_space<vmem>>, %arg4: memref<1x32xf32, #tpu.memory_space<vmem>>, %arg5: memref<16x32xf32, #tpu.memory_space<vmem>>, %arg6: memref<16x32xf32, #tpu.memory_space<vmem>>) attributes {dimension_semantics = [#tpu.dimension_semantics<arbitrary>], iteration_bounds = array<i64: 1>, scalar_prefetch = 1 : i64, scratch_operands = 0 : i64, tpu.core_type = #tpu.core_type<tc>, window_params = [{pipeline_mode = #tpu.pipeline_mode<synchronous>, transform_indices = @transform_0, window_bounds = array<i64: 16, 32>}, {pipeline_mode = #tpu.pipeline_mode<synchronous>, transform_indices = @transform_1, window_bounds = array<i64: 32, 32>}, {pipeline_mode = #tpu.pipeline_mode<synchronous>, transform_indices = @transform_2, window_bounds = array<i64: 1, 32>}, {pipeline_mode = #tpu.pipeline_mode<synchronous>, transform_indices = @transform_3, window_bounds = array<i64: 16, 32>}, {pipeline_mode = #tpu.pipeline_mode<synchronous>, transform_indices = @transform_4, window_bounds = array<i64: 16, 32>}]} {
    %c0 = arith.constant 0 : index
    %c0_0 = arith.constant 0 : index
    %0 = vector.load %arg2[%c0, %c0_0] : memref<16x32xf32, #tpu.memory_space<vmem>>, vector<16x32xf32>
    %c0_1 = arith.constant 0 : index
    %c0_2 = arith.constant 0 : index
    %1 = vector.load %arg3[%c0_1, %c0_2] : memref<32x32xf32, #tpu.memory_space<vmem>>, vector<32x32xf32>
    %cst = arith.constant dense<0.000000e+00> : vector<16x32xf32>
    %2 = tpu.matmul %0, %1, %cst {dimension_numbers = #tpu.dot_dimension_numbers<[1], [0], [0], [1], [0, 0, 1, 1], [], []>} : vector<16x32xf32>, vector<32x32xf32>, vector<16x32xf32> -> vector<16x32xf32>
    %c0_3 = arith.constant 0 : index
    %c0_4 = arith.constant 0 : index
    %3 = vector.load %arg4[%c0_3, %c0_4] : memref<1x32xf32, #tpu.memory_space<vmem>>, vector<1x32xf32>
    %4 = vector.broadcast %3 : vector<1x32xf32> to vector<16x32xf32>
    %5 = arith.addf %2, %4 : vector<16x32xf32>
    %cst_5 = arith.constant 0.000000e+00 : f32
    %6 = vector.broadcast %cst_5 : f32 to vector<16x32xf32>
    %7 = arith.maximumf %5, %6 : vector<16x32xf32>
    %8 = math.absf %5 : vector<16x32xf32>
    %cst_6 = arith.constant 0.000000e+00 : f32
    %9 = vector.broadcast %cst_6 : f32 to vector<16x32xf32>
    %10 = arith.subf %9, %8 : vector<16x32xf32>
    %11 = math.exp %10 : vector<16x32xf32>
    %cst_7 = arith.constant 1.000000e+00 : f32
    %12 = vector.broadcast %cst_7 : f32 to vector<16x32xf32>
    %13 = arith.addf %12, %11 : vector<16x32xf32>
    %14 = math.log %13 : vector<16x32xf32>
    %15 = arith.addf %7, %14 : vector<16x32xf32>
    %c0_8 = arith.constant 0 : index
    %16 = memref.load %arg1[%c0_8] : memref<2xi32, #tpu.memory_space<smem>>
    %17 = arith.index_cast %16 : i32 to index
    %c0_9 = arith.constant 0 : index
    %18 = vector.load %arg5[%17, %c0_9] : memref<16x32xf32, #tpu.memory_space<vmem>>, vector<1x32xf32>
    %19 = vector.extract_strided_slice %15 {offsets = [0, 0], sizes = [8, 32], strides = [1, 1]} : vector<16x32xf32> to vector<8x32xf32>
    %20 = vector.broadcast %18 : vector<1x32xf32> to vector<8x32xf32>
    %21 = arith.mulf %19, %20 : vector<8x32xf32>
    %c0_10 = arith.constant 0 : index
    %c0_11 = arith.constant 0 : index
    %22 = vector.load %arg6[%c0_10, %c0_11] : memref<16x32xf32, #tpu.memory_space<vmem>>, vector<8x32xf32>
    tpu.vector_store %arg6[%c0_10, %c0_11], %21 {strides = array<i32>} : memref<16x32xf32, #tpu.memory_space<vmem>>, vector<8x32xf32>,
    %c1 = arith.constant 1 : index
    %23 = memref.load %arg1[%c1] : memref<2xi32, #tpu.memory_space<smem>>
    %24 = arith.index_cast %23 : i32 to index
    %c0_12 = arith.constant 0 : index
    %25 = vector.load %arg5[%24, %c0_12] : memref<16x32xf32, #tpu.memory_space<vmem>>, vector<1x32xf32>
    %26 = vector.extract_strided_slice %15 {offsets = [8, 0], sizes = [8, 32], strides = [1, 1]} : vector<16x32xf32> to vector<8x32xf32>
    %27 = vector.broadcast %25 : vector<1x32xf32> to vector<8x32xf32>
    %28 = arith.mulf %26, %27 : vector<8x32xf32>
    %c8 = arith.constant 8 : index
    %c0_13 = arith.constant 0 : index
    %29 = vector.load %arg6[%c8, %c0_13] : memref<16x32xf32, #tpu.memory_space<vmem>>, vector<8x32xf32>
    tpu.vector_store %arg6[%c8, %c0_13], %28 {strides = array<i32>} : memref<16x32xf32, #tpu.memory_space<vmem>>, vector<8x32xf32>,
    return
  }
  func.func @transform_0(%arg0: i32, %arg1: memref<2xi32, #tpu.memory_space<smem>>) -> (i32, i32) {
    %c0_i32 = arith.constant 0 : i32
    %c0_i32_0 = arith.constant 0 : i32
    %c0_i32_1 = arith.constant 0 : i32
    return %c0_i32, %c0_i32_0 : i32, i32
  }
  func.func @transform_1(%arg0: i32, %arg1: memref<2xi32, #tpu.memory_space<smem>>) -> (i32, i32) {
    %c0_i32 = arith.constant 0 : i32
    %c0_i32_0 = arith.constant 0 : i32
    %c0_i32_1 = arith.constant 0 : i32
    return %c0_i32, %c0_i32_0 : i32, i32
  }
  func.func @transform_2(%arg0: i32, %arg1: memref<2xi32, #tpu.memory_space<smem>>) -> (i32, i32) {
    %c0_i32 = arith.constant 0 : i32
    %c0_i32_0 = arith.constant 0 : i32
    %c0_i32_1 = arith.constant 0 : i32
    return %c0_i32, %c0_i32_0 : i32, i32
  }
  func.func @transform_3(%arg0: i32, %arg1: memref<2xi32, #tpu.memory_space<smem>>) -> (i32, i32) {
    %c0_i32 = arith.constant 0 : i32
    %c0_i32_0 = arith.constant 0 : i32
    %c0_i32_1 = arith.constant 0 : i32
    return %c0_i32, %c0_i32_0 : i32, i32
  }
  func.func @transform_4(%arg0: i32, %arg1: memref<2xi32, #tpu.memory_space<smem>>) -> (i32, i32) {
    %c0_i32 = arith.constant 0 : i32
    %c0_i32_0 = arith.constant 0 : i32
    %c0_i32_1 = arith.constant 0 : i32
    return %c0_i32, %c0_i32_0 : i32, i32
  }
}

</mosaic_0001>

<bundles_post_ra>
// kernel: tpu_custom_call.1
= control target key start
LH: loop header
LB: loop body
LE: loop exit
PB: predicated region body
PF: predicated region fallthrough
CT: control target
= control target key end

     0   :  { %s490_s0 = inlined_call_operand.hbm [shape: s32[2], index: 0, kind: input, shape index: {}]   ;;  %s491_s1 = inlined_call_operand.hbm [shape: f32[16,32], index: 1, kind: input, shape index: {}]   ;;  %s492_s2 = inlined_call_operand.hbm [shape: f32[32,32], index: 2, kind: input, shape index: {}]   ;;  %s493_s3 = inlined_call_operand.vmem [shape: f32[1,32], index: 3, kind: input, shape index: {}]   ;;  %s494_s4 = inlined_call_operand.hbm [shape: f32[16,32], index: 4, kind: input, shape index: {}]   ;;  %s495_s5 = inlined_call_operand.hbm [shape: f32[16,32], index: 5, kind: output, shape index: {}]  }
   0x1   :  { %s261_s20 = scalar_lea.hbm %s490_s0, 16 }
   0x2   :  { %p262_p0 = scmp.ne.s32.totalorder %s490_s0, %s261_s20  ;;  %p265_p1 = scmp.lt.u32.totalorder %s261_s20, %s490_s0 }
   0x4   :  { %p267_p2 = pnand %p265_p1, %p262_p0 }
   0x6   :  { %270 = shalt.err (!%p267_p2)  }
   0x7   :  { %s367_s25 = smov [#allocation3]  }
   0x8   :  { %11 = dma.hbm_to_smem %s490_s0, 16, %s367_s25, [#allocation2] }
   0x9   :  { %359 = dma.done.wait [#allocation2], 16 }
   0xa   :  { %360 = vsyncadd [#allocation2], 4294967280 }
   0xb   :  { %13 = sfence }
   0xc   :  { %14 = vsyncpa [#allocation5], 0 }
   0xd   :  { %15 = vsyncpa [#allocation8], 0 }
   0xe   :  { %16 = vsyncpa [#allocation6], 0  ;;  %s368_s28 = smov [#allocation7]   ;;  %s369_s30 = smov [#allocation4]  }
   0xf   :  { %s34_s29 = sshll.u32 %s368_s28, 4  ;;  %s22_s6 = sshll.u32 %s369_s30, 4  ;;  %s35_s29 = int_to_ptr.vmem [resolvable:$true] %s34_s29  ;;  %s416_s6 = int_to_ptr.vmem [resolvable:$true] %s22_s6 }
  0x10   :  { %s271_s9 = scalar_lea.hbm %s492_s2, 512 }
  0x11   :  { %p272_p3 = scmp.ne.s32.totalorder %s492_s2, %s271_s9  ;;  %p275_p4 = scmp.lt.u32.totalorder %s271_s9, %s492_s2 }
  0x13   :  { %p277_p5 = pnand %p275_p4, %p272_p3 }
  0x15   :  { %280 = shalt.err (!%p277_p5)
}
  0x16   :  { %s281_s13 = scalar_lea.vmem %s35_s29, 512  ;;  %p286_p7 = scmp.lt.s32.totalorder %s35_s29, %s35_s29 }
  0x17   :  { %p282_p6 = scmp.ne.s32.totalorder %s35_s29, %s281_s13  ;;  %p287_p8 = scmp.lt.s32.totalorder %s281_s13, %s281_s13 }
  0x19   :  { %p288_p9 = por %p287_p8, %p286_p7 }
  0x1b   :  { %p289_p10 = pnand %p288_p9, %p282_p6 }
  0x1d   :  { %292 = shalt.err (!%p289_p10)
}
  0x1e   :  { %s370_s14 = smov 128   ;;  %s371_s15 = smov 8  }
  0x1f   :  { %40 = dma.hbm_to_vmem [thread:$0]  %s492_s2, 512, %s35_s29, [#allocation8], %s370_s14, %s370_s14, %s371_s15  }
  0x20   :  { %s293_s20 = scalar_lea.hbm %s491_s1, 256 }
  0x21   :  { %p294_p11 = scmp.ne.s32.totalorder %s491_s1, %s293_s20  ;;  %p297_p12 = scmp.lt.u32.totalorder %s293_s20, %s491_s1 }
  0x23   :  { %p299_p13 = pnand %p297_p12, %p294_p11 }
  0x25   :  { %302 = shalt.err (!%p299_p13)
}
  0x26   :  { %s303_s25 = scalar_lea.vmem %s416_s6, 256  ;;  %p308_p1 = scmp.lt.s32.totalorder %s416_s6, %s416_s6 }
  0x27   :  { %p304_p0 = scmp.ne.s32.totalorder %s416_s6, %s303_s25  ;;  %p309_p2 = scmp.lt.s32.totalorder %s303_s25, %s303_s25 }
  0x29   :  { %p310_p3 = por %p309_p2, %p308_p1 }
  0x2b   :  { %p311_p4 = pnand %p310_p3, %p304_p0 }
  0x2d   :  { %314 = shalt.err (!%p311_p4)
}
  0x2e   :  { %28 = dma.hbm_to_vmem [thread:$0]  %s491_s1, 256, %s416_s6, [#allocation5], %s370_s14, %s370_s14, %s371_s15  }
  0x2f   :  { %s372_s27 = smov [#allocation9]   ;;  %s315_s7 = scalar_lea.hbm %s494_s4, 256 }
  0x30   :  { %s48_s28 = sshll.u32 %s372_s27, 4  ;;  %p316_p5 = scmp.ne.s32.totalorder %s494_s4, %s315_s7  ;;  %s49_s28 = int_to_ptr.vmem [resolvable:$true] %s48_s28 }
  0x31   :  { %p319_p6 = scmp.lt.u32.totalorder %s315_s7, %s494_s4 }
  0x33   :  { %p321_p7 = pnand %p319_p6, %p316_p5 }
  0x35   :  { %324 = shalt.err (!%p321_p7)
}
  0x36   :  { %s325_s0 = scalar_lea.vmem %s49_s28, 256  ;;  %p330_p9 = scmp.lt.s32.totalorder %s49_s28, %s49_s28 }
  0x37   :  { %p326_p8 = scmp.ne.s32.totalorder %s49_s28, %s325_s0  ;;  %p331_p10 = scmp.lt.s32.totalorder %s325_s0, %s325_s0 }
  0x39   :  { %p332_p11 = por %p331_p10, %p330_p9 }
  0x3b   :  { %p333_p12 = pnand %p332_p11, %p326_p8 }
  0x3d   :  { %336 = shalt.err (!%p333_p12)
}
  0x3e   :  { %54 = dma.hbm_to_vmem [thread:$0]  %s494_s4, 256, %s49_s28, [#allocation8], %s370_s14, %s370_s14, %s371_s15  }
  0x3f   :  { %361 = dma.done.wait [#allocation5], 256  }
  0x40   :  { %362 = vsyncadd [#allocation5], 4294967040 }
  0x41   :  { %363 = dma.done.wait [#allocation8], 768  }
  0x42   :  { %364 = vsyncadd [#allocation8], 4294966528  ;;  %vm77_vm0 = vcmask 261120   ;;  %v66_v0 = vld [vmem:[#allocation7] sm:$0xff]  ;;  %v67_v1 = vld [vmem:[#allocation7 + $0x8] sm:$0xff]  ;;  %s219_s13 = sld [smem:[#allocation3 + $0x1]] }
  0x43   :  { %v68_v2 = vld [vmem:[#allocation7 + $0x10] sm:$0xff]  ;;  %v238_v3 = vpack.c.bf16 %v67_v1, %v66_v0  ;;  %v69_v4 = vld [vmem:[#allocation7 + $0x18] sm:$0xff]  ;;  %s373_s18 = smov [#allocation10]  }
  0x44   :  { %v64_v5 = vld [vmem:[#allocation4] sm:$0xff]  ;;  %v242_v6 = vpack.c.bf16 %v69_v4, %v68_v2  ;;  %v65_v7 = vld [vmem:[#allocation4 + $0x8] sm:$0xff]  ;;  %s200_s19 = sshll.u32 %s373_s18, 4  ;;  %s201_s19 = int_to_ptr.vmem [resolvable:$true] %s200_s19 }
  0x45   :  { %235 = vmatprep.mubr.msk.f32.mxu0 %vm77_vm0, %v64_v5  ;;  %239 = vmatprep.subr.bf16.mxu0 %v238_v3  ;;  %v215_v8 = vld [vmem:[%s493_s3] ss:$0 sm:$0xff]  ;;  %s177_s3 = sld [smem:[#allocation3]]  ;;  %s337_s20 = scalar_lea.vmem %s201_s19, 256 }
  0x46   :  { %241 = vmatpush3.bf16.msra.mxu0 %v238_v3  ;;  %p338_p13 = scmp.ne.s32.totalorder %s201_s19, %s337_s20  ;;  %p342_p0 = scmp.lt.s32.totalorder %s201_s19, %s201_s19 }
  0x47   :  { %243 = vmatprep.subr.bf16.mxu0 %v242_v6  ;;  %p343_p1 = scmp.lt.s32.totalorder %s337_s20, %s337_s20 }
  0x48   :  { %s187_s16 = scalar_lea.vmem [#allocation9], %s219_s13 }
  0x49   :  { %v220_v27 = vld [vmem:[%s187_s16] ss:$0 sm:$0xff]  ;;  %p344_p2 = por %p343_p1, %p342_p0 }
  0x4a   :  { %245 = vmatpush3.bf16.msra.mxu0 %v242_v6 }
  0x4b   :  { %s178_s17 = scalar_lea.vmem [#allocation9], %s177_s3  ;;  %p345_p3 = pnand %p344_p2, %p338_p13 }
  0x4c   :  { %v218_v31 = vld [vmem:[%s178_s17] ss:$0 sm:$0xff] }
  0x4d   :  { %236 = vmatmul.mubr.msk.f32.vlgmr.msra.gmra.mrb[0].mxu0 %vm77_vm0, %v65_v7 }
 0x120   :  { %v237_v9 = vpop.f32.mrb[0].mxu0 }
 0x121   :  { %v156_v10 = vadd.f32 %v237_v9, %v215_v8  ;;  %v150_v11 = vpop.f32.mrb[1].mxu0 }
 0x122   :  { %v151_v12 = vadd.f32 %v215_v8, %v150_v11 }
 0x123   :  { %v162_v13 = vand.u32 2147483647, %v156_v10  ;;  %v160_v25 = vmax.f32 %v156_v10, 0.0 }
 0x124   :  { %v161_v14 = vand.u32 2147483647, %v151_v12  ;;  %v159_v28 = vmax.f32 %v151_v12, 0.0 }
 0x125   :  { %v164_v15 = vsub.f32 0.0, %v162_v13 }
 0x126   :  { %v163_v16 = vsub.f32 0.0, %v161_v14 }
 0x127   :  { %v167_v17 = vmul.f32 1.442695, %v164_v15 }
 0x128   :  { %v165_v18 = vmul.f32 1.442695, %v163_v16 }
 0x129   :  { %253 = vpow2.f32 %v167_v17 }
 0x12a   :  { %255 = vpow2.f32 %v165_v18 }
 0x133   :  { %v254_v19 = vpop.eup %253 }
 0x134   :  { %v256_v20 = vpop.eup %255  ;;  %v170_v21 = vadd.f32 1.0, %v254_v19 }
 0x135   :  { %v169_v22 = vadd.f32 1.0, %v256_v20 }
 0x136   :  { %257 = vlog2.f32 %v170_v21 }
 0x137   :  { %259 = vlog2.f32 %v169_v22 }
 0x140   :  { %v258_v23 = vpop.eup %257 }
 0x141   :  { %v260_v24 = vpop.eup %259  ;;  %v174_v26 = vmul.f32 0.6931472, %v258_v23 }
 0x142   :  { %v172_v29 = vmul.f32 0.6931472, %v260_v24 }
 0x143   :  { %v176_v30 = vadd.f32 %v174_v26, %v160_v25 }
 0x144   :  { %v175_v32 = vadd.f32 %v172_v29, %v159_v28 }
 0x145   :  { %v193_v33 = vmul.f32 %v220_v27, %v176_v30 }
 0x146   :  { %v184_v34 = vmul.f32 %v218_v31, %v175_v32 }
 0x147   :  { %194 = vst.msk [vmem:[#allocation10 + $0x8] sm:$0xff] %vm77_vm0, %v193_v33 }
 0x148   :  { %185 = vst.msk [vmem:[#allocation10] sm:$0xff] %vm77_vm0, %v184_v34 }
 0x149   :  { %348 = shalt.err (!%p345_p3)
}
 0x14a   :  { %s349_s23 = scalar_lea.hbm %s495_s5, 256 }
 0x14b   :  { %p350_p4 = scmp.ne.s32.totalorder %s495_s5, %s349_s23  ;;  %p353_p5 = scmp.lt.u32.totalorder %s349_s23, %s495_s5 }
 0x14d   :  { %p355_p6 = pnand %p353_p5, %p350_p4 }
 0x14f   :  { %358 = shalt.err (!%p355_p6)
}
 0x150   :  { %206 = dma.vmem_to_hbm [thread:$0]  %s201_s19, 256, %s495_s5, [#allocation6], %s370_s14, %s370_s14, %s371_s15  }
 0x151   :  { %365 = dma.done.wait [#allocation6], 256  }
 0x152   :  { %366 = vsyncadd [#allocation6], 4294967040 }
 0x153   :  { %210 = vsyncpa [#allocation5], 1 }
 0x154   :  { %211 = vsyncpa [#allocation8], 1 }
 0x155   :  { %212 = vsyncpa [#allocation6], 1 }

</bundles_post_ra>
